<compile_context>
chip_gen: v7x
topology: tpu7x:2x2x1
jax: 0.10.0
libtpu: 0.0.40
codegen_flags: <defaults>
</compile_context>

<pallas_src>
import functools

import jax
import jax.numpy as jnp
import numpy as np
from jax.experimental import pallas as pl
from jax.experimental.pallas import tpu as pltpu


def _action_kernel(h_ref, w1_ref, b1_ref, w2_ref, b2_ref, o_ref):
    # h_ref: (TB, D); w1_ref: (D, H); b1_ref: (1, H); w2_ref: (H, 1); b2_ref: (1, 1)
    h = h_ref[...].astype(jnp.float32)
    w1 = w1_ref[...].astype(jnp.float32)
    w2 = w2_ref[...].astype(jnp.float32)

    hid = jnp.dot(h, w1, preferred_element_type=jnp.float32)          # (TB, H)
    hid = hid + b1_ref[...].astype(jnp.float32)

    out = jnp.dot(hid, w2, preferred_element_type=jnp.float32)        # (TB, 1)
    out = out + b2_ref[...].astype(jnp.float32)

    o_ref[...] = out.astype(o_ref.dtype)


def _pick_batch_tile(B):
    """Largest tile that divides B; big tiles amortize ~0.35us/grid-step."""
    for tb in (512, 256, 128, 64, 32, 16, 8):
        if B % tb == 0:
            return tb
    return B  # small / odd batch: one full block (full-dim blocks are legal)


@jax.jit
def action_forward(h, w1, b1, w2, b2):
    """h: (B, latent_dim); w1: (D, 32); b1: (1, 32); w2: (32, 1); b2: (1, 1)."""
    B, D = h.shape
    H = w1.shape[1]
    tb = _pick_batch_tile(B)
    grid = (B // tb,)

    flops = 2 * B * D * H + 2 * B * H
    bytes_accessed = (h.size * h.dtype.itemsize
                      + w1.size * w1.dtype.itemsize + b1.size * b1.dtype.itemsize
                      + w2.size * w2.dtype.itemsize + b2.size * b2.dtype.itemsize
                      + B * 1 * h.dtype.itemsize)

    return pl.pallas_call(
        _action_kernel,
        out_shape=jax.ShapeDtypeStruct((B, 1), h.dtype),
        grid_spec=pltpu.PrefetchScalarGridSpec(
            num_scalar_prefetch=0,
            grid=grid,
            in_specs=[
                pl.BlockSpec((tb, D), lambda i: (i, 0)),   # h tile
                pl.BlockSpec((D, H), lambda i: (0, 0)),    # W1 (resident)
                pl.BlockSpec((1, H), lambda i: (0, 0)),    # b1
                pl.BlockSpec((H, 1), lambda i: (0, 0)),    # W2
                pl.BlockSpec((1, 1), lambda i: (0, 0)),    # b2
            ],
            out_specs=pl.BlockSpec((tb, 1), lambda i: (i, 0)),
        ),
        compiler_params=pltpu.CompilerParams(
            dimension_semantics=("parallel",)),
        cost_estimate=pl.CostEstimate(flops=flops, transcendentals=0,
                                      bytes_accessed=bytes_accessed),
    )(h, w1, b1, w2, b2)


class ActionPallas:
    """JAX/Pallas port of ACTION: fc(hidden(h)) fused into one kernel."""

    HIDDEN = 32

    def __init__(self, latent_dim, key=None, dtype=jnp.float32):
        if key is None:
            key = jax.random.PRNGKey(0)
        k1, k2, k3, k4 = jax.random.split(key, 4)
        # PyTorch nn.Linear default init: U(-1/sqrt(fan_in), 1/sqrt(fan_in)).
        bound1 = 1.0 / float(np.sqrt(latent_dim))
        bound2 = 1.0 / float(np.sqrt(self.HIDDEN))
        self.w1 = jax.random.uniform(k1, (latent_dim, self.HIDDEN), dtype,
                                     -bound1, bound1)
        self.b1 = jax.random.uniform(k2, (1, self.HIDDEN), dtype, -bound1, bound1)
        self.w2 = jax.random.uniform(k3, (self.HIDDEN, 1), dtype, -bound2, bound2)
        self.b2 = jax.random.uniform(k4, (1, 1), dtype, -bound2, bound2)

    def __call__(self, h):
        return action_forward(h, self.w1, self.b1, self.w2, self.b2)


def _reference(h, w1, b1, w2, b2):
    """Pure-JAX reference mirroring the PyTorch forward."""
    hid = h.astype(jnp.float32) @ w1.astype(jnp.float32) + b1.astype(jnp.float32)
    out = hid @ w2.astype(jnp.float32) + b2.astype(jnp.float32)
    return out.astype(h.dtype)


if __name__ == "__main__":
    B, latent_dim = 16, 64  # small shapes; hidden=32 is fixed by the module

    key = jax.random.PRNGKey(0)
    k_param, k_h = jax.random.split(key)
    module = ActionPallas(latent_dim, key=k_param, dtype=jnp.float32)
    h = jax.random.normal(k_h, (B, latent_dim), dtype=jnp.float32)

    out = module(h)
    jax.block_until_ready(out)
    assert out.shape == (B, 1), out.shape

    ref = _reference(h, module.w1, module.b1, module.w2, module.b2)
    np.testing.assert_allclose(np.array(out), np.array(ref), rtol=1e-5, atol=1e-5)

    print("KERNEL_OK")
</pallas_src>

<mosaic_0001>
module attributes {stable_mosaic.version = 11 : i64} {
  func.func @_action_kernel(%arg0: i32, %arg1: memref<16x64xf32, #tpu.memory_space<vmem>>, %arg2: memref<64x32xf32, #tpu.memory_space<vmem>>, %arg3: memref<1x32xf32, #tpu.memory_space<vmem>>, %arg4: memref<32x1xf32, #tpu.memory_space<vmem>>, %arg5: memref<1x1xf32, #tpu.memory_space<vmem>>, %arg6: memref<16x1xf32, #tpu.memory_space<vmem>>) attributes {dimension_semantics = [#tpu.dimension_semantics<parallel>], iteration_bounds = array<i64: 1>, scalar_prefetch = 0 : i64, scratch_operands = 0 : i64, tpu.core_type = #tpu.core_type<tc>, window_params = [{transform_indices = @transform_0, window_bounds = array<i64: 16, 64>}, {pipeline_mode = #tpu.pipeline_mode<synchronous>, transform_indices = @transform_1, window_bounds = array<i64: 64, 32>}, {pipeline_mode = #tpu.pipeline_mode<synchronous>, transform_indices = @transform_2, window_bounds = array<i64: 1, 32>}, {pipeline_mode = #tpu.pipeline_mode<synchronous>, transform_indices = @transform_3, window_bounds = array<i64: 32, 1>}, {pipeline_mode = #tpu.pipeline_mode<synchronous>, transform_indices = @transform_4, window_bounds = array<i64: 1, 1>}, {transform_indices = @transform_5, window_bounds = array<i64: 16, 1>}]} {
    %c0 = arith.constant 0 : index
    %c0_0 = arith.constant 0 : index
    %0 = vector.load %arg1[%c0, %c0_0] : memref<16x64xf32, #tpu.memory_space<vmem>>, vector<16x64xf32>
    %c0_1 = arith.constant 0 : index
    %c0_2 = arith.constant 0 : index
    %1 = vector.load %arg2[%c0_1, %c0_2] : memref<64x32xf32, #tpu.memory_space<vmem>>, vector<64x32xf32>
    %c0_3 = arith.constant 0 : index
    %c0_4 = arith.constant 0 : index
    %2 = vector.load %arg4[%c0_3, %c0_4] : memref<32x1xf32, #tpu.memory_space<vmem>>, vector<32x1xf32>
    %cst = arith.constant dense<0.000000e+00> : vector<16x32xf32>
    %3 = tpu.matmul %0, %1, %cst {dimension_numbers = #tpu.dot_dimension_numbers<[1], [0], [0], [1], [0, 0, 1, 1], [], []>} : vector<16x64xf32>, vector<64x32xf32>, vector<16x32xf32> -> vector<16x32xf32>
    %c0_5 = arith.constant 0 : index
    %c0_6 = arith.constant 0 : index
    %4 = vector.load %arg3[%c0_5, %c0_6] : memref<1x32xf32, #tpu.memory_space<vmem>>, vector<1x32xf32>
    %5 = vector.broadcast %4 : vector<1x32xf32> to vector<16x32xf32>
    %6 = arith.addf %3, %5 : vector<16x32xf32>
    %cst_7 = arith.constant dense<0.000000e+00> : vector<16x1xf32>
    %7 = tpu.matmul %6, %2, %cst_7 {dimension_numbers = #tpu.dot_dimension_numbers<[1], [0], [0], [1], [0, 0, 1, 1], [], []>} : vector<16x32xf32>, vector<32x1xf32>, vector<16x1xf32> -> vector<16x1xf32>
    %c0_8 = arith.constant 0 : index
    %c0_9 = arith.constant 0 : index
    %8 = vector.load %arg5[%c0_8, %c0_9] : memref<1x1xf32, #tpu.memory_space<vmem>>, vector<1x1xf32>
    %9 = vector.broadcast %8 : vector<1x1xf32> to vector<16x1xf32>
    %10 = arith.addf %7, %9 : vector<16x1xf32>
    %c0_10 = arith.constant 0 : index
    %c0_11 = arith.constant 0 : index
    %11 = vector.load %arg6[%c0_10, %c0_11] : memref<16x1xf32, #tpu.memory_space<vmem>>, vector<16x1xf32>
    tpu.vector_store %arg6[%c0_10, %c0_11], %10 {strides = array<i32>} : memref<16x1xf32, #tpu.memory_space<vmem>>, vector<16x1xf32>,
    return
  }
  func.func @transform_0(%arg0: i32) -> (i32, i32) {
    %c0_i32 = arith.constant 0 : i32
    %c0_i32_0 = arith.constant 0 : i32
    return %arg0, %c0_i32 : i32, i32
  }
  func.func @transform_1(%arg0: i32) -> (i32, i32) {
    %c0_i32 = arith.constant 0 : i32
    %c0_i32_0 = arith.constant 0 : i32
    %c0_i32_1 = arith.constant 0 : i32
    return %c0_i32, %c0_i32_0 : i32, i32
  }
  func.func @transform_2(%arg0: i32) -> (i32, i32) {
    %c0_i32 = arith.constant 0 : i32
    %c0_i32_0 = arith.constant 0 : i32
    %c0_i32_1 = arith.constant 0 : i32
    return %c0_i32, %c0_i32_0 : i32, i32
  }
  func.func @transform_3(%arg0: i32) -> (i32, i32) {
    %c0_i32 = arith.constant 0 : i32
    %c0_i32_0 = arith.constant 0 : i32
    %c0_i32_1 = arith.constant 0 : i32
    return %c0_i32, %c0_i32_0 : i32, i32
  }
  func.func @transform_4(%arg0: i32) -> (i32, i32) {
    %c0_i32 = arith.constant 0 : i32
    %c0_i32_0 = arith.constant 0 : i32
    %c0_i32_1 = arith.constant 0 : i32
    return %c0_i32, %c0_i32_0 : i32, i32
  }
  func.func @transform_5(%arg0: i32) -> (i32, i32) {
    %c0_i32 = arith.constant 0 : i32
    %c0_i32_0 = arith.constant 0 : i32
    return %arg0, %c0_i32 : i32, i32
  }
}

</mosaic_0001>

<bundles_post_ra>
// kernel: action_forward.1
= control target key start
LH: loop header
LB: loop body
LE: loop exit
PB: predicated region body
PF: predicated region fallthrough
CT: control target
= control target key end

     0   :  { %vm43_vm0 = vcmask 523264   ;;  %vm132_vm1 = vcmask 261120   ;;  %vm214_vm2 = vcmask 7168   ;;  %s383_s1 = inlined_call_operand.vmem [shape: f32[64,32], index: 1, kind: input, shape index: {}]   ;;  %s384_s0 = inlined_call_operand.vmem [shape: f32[16,64], index: 0, kind: input, shape index: {}]   ;;  %s385_s3 = inlined_call_operand.vmem [shape: f32[32,1], index: 3, kind: input, shape index: {}]   ;;  %s386_s4 = inlined_call_operand.<no memory space> [shape: f32[1,1], index: 4, kind: input, shape index: {}]   ;;  %s387_s2 = inlined_call_operand.vmem [shape: f32[1,32], index: 2, kind: input, shape index: {}]   ;;  %s388_s5 = inlined_call_operand.vmem [shape: f32[16,1], index: 5, kind: output, shape index: {}]  }
   0x1   :  { %v24_v0 = vld [vmem:[%s383_s1] sm:$0xff]  ;;  %v25_v1 = vld [vmem:[%s383_s1 + $0x8] sm:$0xff]  ;;  %v26_v2 = vld [vmem:[%s383_s1 + $0x10] sm:$0xff]  ;;  %v10_v20 = vstv %s386_s4 }
   0x2   :  { %v273_v3 = vpack.c.bf16 %v25_v1, %v24_v0  ;;  %v27_v4 = vld [vmem:[%s383_s1 + $0x18] sm:$0xff]  ;;  %v28_v6 = vld [vmem:[%s383_s1 + $0x20] sm:$0xff]  ;;  %v29_v7 = vld [vmem:[%s383_s1 + $0x28] sm:$0xff]  ;;  %11 = vst [vmem:[#allocation2] sm:$0x1] %v10_v20 }
   0x3   :  { %v277_v5 = vpack.c.bf16 %v27_v4, %v26_v2  ;;  %v22_v8 = vld [vmem:[%s384_s0] sm:$0xff]  ;;  %v33_v10 = vld [vmem:[%s385_s3 + $0x8] sm:$0xff]  ;;  %v281_v12 = vpack.c.bf16 %v29_v7, %v28_v6  ;;  %v30_v13 = vld [vmem:[%s383_s1 + $0x30] sm:$0xff] }
   0x4   :  { %274 = vmatprep.subr.bf16.mxu0 %v273_v3  ;;  %259 = vmatprep.mubr.msk.f32.mxu0 %vm43_vm0, %v22_v8  ;;  %v32_v9 = vld [vmem:[%s385_s3] sm:$0xff]  ;;  %v31_v14 = vld [vmem:[%s383_s1 + $0x38] sm:$0xff]  ;;  %v23_v16 = vld [vmem:[%s384_s0 + $0x8] sm:$0xff] }
   0x5   :  { %276 = vmatpush3.bf16.msra.mxu0 %v273_v3  ;;  %v289_v11 = vpack.c.bf16 %v33_v10, %v32_v9  ;;  %v285_v15 = vpack.c.bf16 %v31_v14, %v30_v13  ;;  %v34_v17 = vld [vmem:[%s385_s3 + $0x10] sm:$0xff]  ;;  %v35_v18 = vld [vmem:[%s385_s3 + $0x18] sm:$0xff]  ;;  %v221_v21 = vld [vmem:[%s387_s2] ss:$0 sm:$0xff] }
   0x6   :  { %278 = vmatprep.subr.bf16.mxu0 %v277_v5  ;;  %v293_v19 = vpack.c.bf16 %v35_v18, %v34_v17 }
   0x7   :  { %290 = vmatprep.subr.bf16.mxu1 %v289_v11 }
   0x8   :  { %292 = vmatpush3.bf16.msra.mxu1 %v289_v11 }
   0x9   :  { %280 = vmatpush3.bf16.msra.mxu0 %v277_v5  ;;  %294 = vmatprep.subr.bf16.mxu1 %v293_v19  ;;  %v224_v26 = vld [vmem:[#allocation2] ss:$0 sm:$0xff] }
   0xa   :  { %282 = vmatprep.subr.bf16.mxu0 %v281_v12 }
   0xc   :  { %296 = vmatpush3.bf16.msra.mxu1 %v293_v19 }
   0xd   :  { %284 = vmatpush3.bf16.msra.mxu0 %v281_v12 }
   0xe   :  { %286 = vmatprep.subr.bf16.mxu0 %v285_v15 }
  0x11   :  { %288 = vmatpush3.bf16.msra.mxu0 %v285_v15 }
  0x14   :  { %260 = vmatmul.mubr.msk.f32.vlgmr.msra.gmra.mrb[0].mxu0 %vm43_vm0, %v23_v16 }
  0xe7   :  { %v261_v22 = vpop.f32.mrb[0].mxu0 }
  0xe8   :  { %v116_v23 = vpop.f32.mrb[1].mxu0  ;;  %v122_v25 = vadd.f32 %v261_v22, %v221_v21 }
  0xe9   :  { %v117_v24 = vadd.f32 %v221_v21, %v116_v23 }
  0xeb   :  { %270 = vmatprep.mubr.msk.f32.mxu1 %vm132_vm1, %v117_v24 }
  0xec   :  { %271 = vmatmul.mubr.msk.f32.vlgmr.msra.gmra.mrb[0].mxu1 %vm132_vm1, %v122_v25 }
 0x1bf   :  { %v272_v27 = vpop.f32.mrb[0].mxu1 }
 0x1c0   :  { %v211_v28 = vadd.f32 %v272_v27, %v224_v26  ;;  %v205_v29 = vpop.f32.mrb[1].mxu1 }
 0x1c1   :  { %v206_v30 = vadd.f32 %v224_v26, %v205_v29 }
 0x1c2   :  { %216 = vst.msk [vmem:[%s388_s5 + $0x8] sm:$0xff] %vm214_vm2, %v211_v28 }
 0x1c3   :  { %215 = vst.msk [vmem:[%s388_s5] sm:$0xff] %vm214_vm2, %v206_v30 }

</bundles_post_ra>
